<compile_context>
chip_gen: v6e
topology: v6e:2x2x1
jax: 0.10.0
libtpu: 0.0.40
codegen_flags: <defaults>
</compile_context>

<pallas_src>
import jax
import jax.numpy as jnp
from jax.experimental import pallas as pl
from jax.experimental.pallas import tpu as pltpu

LANE = 128
_BN_EPS = 1e-5


def _round_up(x, m):
    return (x + m - 1) // m * m


def _pick_row_tile(m):
    # Row tile for the gridded (M, C) stages.  At CIFAR scale a 128..512-row
    # tile keeps each stage's working set to a few hundred KiB, far under any
    # generation's VMEM (v5e/v6e 128 MiB, v7x 64 MiB).
    # TODO(synk): for large N*H*W derive the tile from the per-generation VMEM
    # budget (pltpu.get_tpu_info) and set vmem_limit_bytes accordingly.
    for t in (512, 256, 128, 64, 32, 16, 8):
        if t <= m and m % t == 0:
            return t
    return m


def _bn_apply(z, s, sq, gamma, beta, inv_m, eps=_BN_EPS):
    """Training-mode BatchNorm from pre-reduced sums: one FMA per element."""
    mean = s * inv_m
    var = jnp.maximum(sq * inv_m - mean * mean, 0.0)   # guard E[x^2]-m^2 < 0
    a = gamma * jax.lax.rsqrt(var + eps)
    return z * a + (beta - mean * a)


# --------------------------------------------------------------------------
# Stage 1: conv1 (single im2col matmul) [+ 1x1 projection conv] + batch sums.
# --------------------------------------------------------------------------
def _make_stage1_kernel(has_projection):
    def kernel(*refs):
        if has_projection:
            (xt_ref, xs_ref, w1_ref, wsc_ref,
             z1_ref, zsc_ref, s1_ref, q1_ref, ssc_ref, qsc_ref) = refs
        else:
            xt_ref, w1_ref, z1_ref, s1_ref, q1_ref = refs

        step = pl.program_id(0)

        # conv1: one MXU matmul, bf16 inputs, f32 accumulation.
        z1 = jnp.dot(xt_ref[...], w1_ref[...], preferred_element_type=jnp.float32)
        z1_ref[...] = z1

        @pl.when(step == 0)
        def _():
            s1_ref[...] = jnp.zeros_like(s1_ref)
            q1_ref[...] = jnp.zeros_like(q1_ref)

        s1_ref[...] += jnp.sum(z1, axis=0, keepdims=True)
        q1_ref[...] += jnp.sum(z1 * z1, axis=0, keepdims=True)

        if has_projection:
            zsc = jnp.dot(xs_ref[...], wsc_ref[...],
                          preferred_element_type=jnp.float32)
            zsc_ref[...] = zsc

            @pl.when(step == 0)
            def _():
                ssc_ref[...] = jnp.zeros_like(ssc_ref)
                qsc_ref[...] = jnp.zeros_like(qsc_ref)

            ssc_ref[...] += jnp.sum(zsc, axis=0, keepdims=True)
            qsc_ref[...] += jnp.sum(zsc * zsc, axis=0, keepdims=True)

    return kernel


# --------------------------------------------------------------------------
# Stage 2: bn1 + ReLU, conv2 via zero-haloed scratch + single im2col matmul,
#          batch sums for bn2.  Grid is over images (no spatial halo needed).
# --------------------------------------------------------------------------
def _make_stage2_kernel(Ho, Wo, Cp, inv_m):
    HoWo = Ho * Wo
    WPAD = 8  # left halo padded to a full sublane tile -> aligned interior store

    def kernel(z1_ref, s1_ref, q1_ref, g1_ref, b1_ref, w2_ref,
               z2_ref, s2_ref, q2_ref, pad_ref):
        n = pl.program_id(0)

        # bn1 (global batch stats from stage 1) + ReLU, f32.
        h1 = _bn_apply(z1_ref[...], s1_ref[...], q1_ref[...],
                       g1_ref[...], b1_ref[...], inv_m)
        h1 = jnp.maximum(h1, 0.0)

        # Zero-haloed scratch image: halo zeroed once (scratch persists across
        # grid steps), interior overwritten every step with an aligned store.
        @pl.when(n == 0)
        def _():
            pad_ref[...] = jnp.zeros_like(pad_ref)

        pad_ref[1:1 + Ho, WPAD:WPAD + Wo, :] = h1.reshape(Ho, Wo, Cp)

        # conv2 (3x3, stride 1, pad 1): 9 static tap slices concatenated on
        # the lane axis -> one (HoWo, 9*Cp) x (9*Cp, Cp) bf16 matmul.
        taps = []
        for dy in range(3):
            for dx in range(3):
                tap = pad_ref[dy:dy + Ho, WPAD - 1 + dx:WPAD - 1 + dx + Wo, :]
                taps.append(tap.reshape(HoWo, Cp))
        im2col = jnp.concatenate(taps, axis=-1).astype(jnp.bfloat16)
        z2 = jnp.dot(im2col, w2_ref[...], preferred_element_type=jnp.float32)
        z2_ref[...] = z2

        @pl.when(n == 0)
        def _():
            s2_ref[...] = jnp.zeros_like(s2_ref)
            q2_ref[...] = jnp.zeros_like(q2_ref)

        s2_ref[...] += jnp.sum(z2, axis=0, keepdims=True)
        q2_ref[...] += jnp.sum(z2 * z2, axis=0, keepdims=True)

    return kernel


# --------------------------------------------------------------------------
# Stage 3: bn2 + shortcut (BN'd projection or identity) + add + ReLU.
# --------------------------------------------------------------------------
def _make_stage3_kernel(has_projection, inv_m):
    def kernel(*refs):
        if has_projection:
            (z2_ref, zsc_ref, s2_ref, q2_ref, g2_ref, b2_ref,
             ssc_ref, qsc_ref, gsc_ref, bsc_ref, o_ref) = refs
        else:
            z2_ref, sc_ref, s2_ref, q2_ref, g2_ref, b2_ref, o_ref = refs

        h2 = _bn_apply(z2_ref[...], s2_ref[...], q2_ref[...],
                       g2_ref[...], b2_ref[...], inv_m)
        if has_projection:
            sc = _bn_apply(zsc_ref[...], ssc_ref[...], qsc_ref[...],
                           gsc_ref[...], bsc_ref[...], inv_m)
        else:
            sc = sc_ref[...]
        o_ref[...] = jnp.maximum(h2 + sc, 0.0).astype(o_ref.dtype)

    return kernel


# --------------------------------------------------------------------------
# Wrapper (glue): padding, im2col tap extraction, lane-padded weight relayout,
# three gridded pallas_calls.
# --------------------------------------------------------------------------
def basic_block_forward(x_nchw, params, stride):
    """Pallas implementation of BasicBlock.forward.  x_nchw: (N, Cin, H, W)."""
    N, Cin, H, W = x_nchw.shape
    planes = params["w1"].shape[0]
    Ho = (H + 2 - 3) // stride + 1
    Wo = (W + 2 - 3) // stride + 1
    M1 = N * Ho * Wo
    HoWo = Ho * Wo
    has_projection = (stride != 1) or (Cin != planes)

    f32, bf16 = jnp.float32, jnp.bfloat16
    Cp = _round_up(planes, LANE)       # lane-dense channel dim (output stores)
    K1 = 9 * Cin
    K1p = _round_up(K1, LANE)          # lane-dense conv1 contraction dim
    Cin_p = _round_up(Cin, LANE)
    TM = _pick_row_tile(M1)
    inv_m = 1.0 / float(M1)

    x = jnp.transpose(x_nchw, (0, 2, 3, 1)).astype(f32)        # NHWC

    # ---- glue: conv1 im2col patches (strided tap extraction), bf16 ---------
    # TODO(synk): on v5e (lowest HBM BW) the 9x duplication here could be
    # avoided by extracting the taps in-kernel from one padded copy of x.
    xp = jnp.pad(x, ((0, 0), (1, 1), (1, 1), (0, 0)))
    taps = []
    for dy in range(3):
        for dx in range(3):
            t = xp[:, dy:dy + (Ho - 1) * stride + 1:stride,
                   dx:dx + (Wo - 1) * stride + 1:stride, :]
            taps.append(t.reshape(M1, Cin))
    xt = jnp.concatenate(taps, axis=-1)                        # (M1, 9*Cin)
    xt = jnp.pad(xt, ((0, 0), (0, K1p - K1))).astype(bf16)

    # ---- glue: weight / BN-param relayout, channels padded to 128 lanes ----
    w1 = jnp.transpose(params["w1"], (2, 3, 1, 0)).reshape(K1, planes)
    w1 = jnp.pad(w1, ((0, K1p - K1), (0, Cp - planes))).astype(bf16)
    w2 = jnp.transpose(params["w2"], (2, 3, 1, 0))             # (3,3,cin,cout)
    w2 = jnp.pad(w2, ((0, 0), (0, 0), (0, Cp - planes), (0, Cp - planes)))
    w2 = w2.reshape(9 * Cp, Cp).astype(bf16)

    def pad_gb(g, b):
        g = jnp.pad(g.reshape(1, planes).astype(f32),
                    ((0, 0), (0, Cp - planes)), constant_values=1.0)
        b = jnp.pad(b.reshape(1, planes).astype(f32), ((0, 0), (0, Cp - planes)))
        return g, b

    g1, b1 = pad_gb(params["g1"], params["b1"])
    g2, b2 = pad_gb(params["g2"], params["b2"])

    stat = jax.ShapeDtypeStruct((1, Cp), f32)
    stat_spec = pl.BlockSpec((1, Cp), lambda i: (0, 0))
    row_spec = pl.BlockSpec((TM, Cp), lambda i: (i, 0))
    arb = pltpu.CompilerParams(dimension_semantics=("arbitrary",))
    par = pltpu.CompilerParams(dimension_semantics=("parallel",))

    # ---- stage 1 ------------------------------------------------------------
    in_specs = [pl.BlockSpec((TM, K1p), lambda i: (i, 0))]
    inputs = [xt]
    out_shape = [jax.ShapeDtypeStruct((M1, Cp), f32)]
    out_specs = [row_spec]
    if has_projection:
        xs = x[:, ::stride, ::stride, :].reshape(M1, Cin)
        xs = jnp.pad(xs, ((0, 0), (0, Cin_p - Cin))).astype(bf16)
        wsc = jnp.transpose(params["wsc"][:, :, 0, 0], (1, 0))  # (Cin, planes)
        wsc = jnp.pad(wsc, ((0, Cin_p - Cin), (0, Cp - planes))).astype(bf16)
        gsc, bsc = pad_gb(params["gsc"], params["bsc"])
        in_specs += [pl.BlockSpec((TM, Cin_p), lambda i: (i, 0)),
                     pl.BlockSpec((K1p, Cp), lambda i: (0, 0)),
                     pl.BlockSpec((Cin_p, Cp), lambda i: (0, 0))]
        inputs += [xs, w1, wsc]
        out_shape += [jax.ShapeDtypeStruct((M1, Cp), f32), stat, stat, stat, stat]
        out_specs += [row_spec, stat_spec, stat_spec, stat_spec, stat_spec]
    else:
        in_specs += [pl.BlockSpec((K1p, Cp), lambda i: (0, 0))]
        inputs += [w1]
        out_shape += [stat, stat]
        out_specs += [stat_spec, stat_spec]

    res1 = pl.pallas_call(
        _make_stage1_kernel(has_projection),
        grid=(M1 // TM,),
        in_specs=in_specs, out_specs=out_specs, out_shape=out_shape,
        compiler_params=arb,
    )(*inputs)
    if has_projection:
        z1, zsc, s1, q1, ssc, qsc = res1
    else:
        z1, s1, q1 = res1

    # ---- stage 2 ------------------------------------------------------------
    img_spec = pl.BlockSpec((HoWo, Cp), lambda n: (n, 0))
    cstat = pl.BlockSpec((1, Cp), lambda n: (0, 0))
    z2, s2, q2 = pl.pallas_call(
        _make_stage2_kernel(Ho, Wo, Cp, inv_m),
        grid=(N,),
        in_specs=[img_spec, cstat, cstat, cstat, cstat,
                  pl.BlockSpec((9 * Cp, Cp), lambda n: (0, 0))],
        out_specs=[img_spec, cstat, cstat],
        out_shape=[jax.ShapeDtypeStruct((M1, Cp), f32), stat, stat],
        scratch_shapes=[pltpu.VMEM((Ho + 2, Wo + 9, Cp), f32)],
        compiler_params=arb,
    )(z1, s1, q1, g1, b1, w2)

    # ---- stage 3 ------------------------------------------------------------
    if has_projection:
        sc_in = zsc
    else:
        sc_in = jnp.pad(x.reshape(M1, planes),
                        ((0, 0), (0, Cp - planes))).astype(f32)

    in_specs3 = [row_spec, row_spec, stat_spec, stat_spec, stat_spec, stat_spec]
    inputs3 = [z2, sc_in, s2, q2, g2, b2]
    if has_projection:
        in_specs3 += [stat_spec, stat_spec, stat_spec, stat_spec]
        inputs3 += [ssc, qsc, gsc, bsc]

    out_flat = pl.pallas_call(
        _make_stage3_kernel(has_projection, inv_m),
        grid=(M1 // TM,),
        in_specs=in_specs3,
        out_specs=row_spec,
        out_shape=jax.ShapeDtypeStruct((M1, Cp), f32),
        compiler_params=par,
    )(*inputs3)

    out = out_flat[:, :planes].reshape(N, Ho, Wo, planes)
    return jnp.transpose(out, (0, 3, 1, 2))                    # back to NCHW


# ------------------------- pure-JAX reference -------------------------------
def _reference_forward(x_nchw, params, stride, matmul_dtype=jnp.float32):
    x = jnp.transpose(x_nchw, (0, 2, 3, 1)).astype(jnp.float32)

    def conv(z, w_oihw, s, pad):
        return jax.lax.conv_general_dilated(
            z.astype(matmul_dtype),
            jnp.transpose(w_oihw, (2, 3, 1, 0)).astype(matmul_dtype),
            (s, s), ((pad, pad), (pad, pad)),
            dimension_numbers=("NHWC", "HWIO", "NHWC"),
            preferred_element_type=jnp.float32,
            precision=jax.lax.Precision.HIGHEST)

    def bn(z, g, b, eps=_BN_EPS):
        m = jnp.mean(z, axis=(0, 1, 2), keepdims=True)
        v = jnp.mean((z - m) ** 2, axis=(0, 1, 2), keepdims=True)
        return (z - m) * jax.lax.rsqrt(v + eps) * g + b

    planes = params["w1"].shape[0]
    h = jax.nn.relu(bn(conv(x, params["w1"], stride, 1),
                       params["g1"], params["b1"]))
    h = bn(conv(h, params["w2"], 1, 1), params["g2"], params["b2"])
    if stride != 1 or x.shape[-1] != planes:
        sc = bn(conv(x, params["wsc"], stride, 0), params["gsc"], params["bsc"])
    else:
        sc = x
    out = jax.nn.relu(h + sc)
    return jnp.transpose(out, (0, 3, 1, 2))


def init_params(key, in_planes, planes, stride):
    ks = jax.random.split(key, 9)
    p = {
        "w1": 0.1 * jax.random.normal(ks[0], (planes, in_planes, 3, 3), jnp.float32),
        "g1": 1.0 + 0.1 * jax.random.normal(ks[1], (planes,), jnp.float32),
        "b1": 0.1 * jax.random.normal(ks[2], (planes,), jnp.float32),
        "w2": 0.1 * jax.random.normal(ks[3], (planes, planes, 3, 3), jnp.float32),
        "g2": 1.0 + 0.1 * jax.random.normal(ks[4], (planes,), jnp.float32),
        "b2": 0.1 * jax.random.normal(ks[5], (planes,), jnp.float32),
    }
    if stride != 1 or in_planes != planes:
        p["wsc"] = 0.1 * jax.random.normal(ks[6], (planes, in_planes, 1, 1), jnp.float32)
        p["gsc"] = 1.0 + 0.1 * jax.random.normal(ks[7], (planes,), jnp.float32)
        p["bsc"] = 0.1 * jax.random.normal(ks[8], (planes,), jnp.float32)
    return p


if __name__ == "__main__":
    key = jax.random.PRNGKey(0)

    configs = [
        # (N, Cin, H, W, planes, stride)
        (2, 4, 16, 16, 8, 2),    # downsampling block: projection shortcut
        (2, 8, 16, 16, 8, 1),    # identity-shortcut block
    ]
    for idx, (N, Cin, H, W, planes, stride) in enumerate(configs):
        k_x, k_p = jax.random.split(jax.random.fold_in(key, idx))
        x = jax.random.normal(k_x, (N, Cin, H, W), jnp.float32)
        params = init_params(k_p, Cin, planes, stride)

        out = jax.block_until_ready(basic_block_forward(x, params, stride))
        assert out.shape == (N, planes, H // stride, W // stride), out.shape

        # Tight check vs a reference using the same bf16 matmul inputs
        # (isolates implementation correctness from bf16 quantization), plus a
        # looser sanity check against the pure-f32 reference.
        ref_bf16 = _reference_forward(x, params, stride, jnp.bfloat16)
        ref_f32 = _reference_forward(x, params, stride, jnp.float32)
        err_impl = float(jnp.max(jnp.abs(out - ref_bf16)))
        err_f32 = float(jnp.max(jnp.abs(out - ref_f32)))
        assert err_impl < 1e-2, f"cfg{idx}: mismatch vs bf16 reference: {err_impl}"
        assert err_f32 < 1e-1, f"cfg{idx}: drift vs f32 reference: {err_f32}"

    print("KERNEL_OK")
</pallas_src>

<mosaic_0001>
module attributes {stable_mosaic.version = 11 : i64} {
  func.func @kernel(%arg0: i32, %arg1: memref<128x128xbf16, #tpu.memory_space<vmem>>, %arg2: memref<128x128xbf16, #tpu.memory_space<vmem>>, %arg3: memref<128x128xbf16, #tpu.memory_space<vmem>>, %arg4: memref<128x128xbf16, #tpu.memory_space<vmem>>, %arg5: memref<128x128xf32, #tpu.memory_space<vmem>>, %arg6: memref<128x128xf32, #tpu.memory_space<vmem>>, %arg7: memref<1x128xf32, #tpu.memory_space<vmem>>, %arg8: memref<1x128xf32, #tpu.memory_space<vmem>>, %arg9: memref<1x128xf32, #tpu.memory_space<vmem>>, %arg10: memref<1x128xf32, #tpu.memory_space<vmem>>) attributes {dimension_semantics = [#tpu.dimension_semantics<arbitrary>], iteration_bounds = array<i64: 1>, scalar_prefetch = 0 : i64, scratch_operands = 0 : i64, tpu.core_type = #tpu.core_type<tc>, window_params = [{transform_indices = @transform_0, window_bounds = array<i64: 128, 128>}, {transform_indices = @transform_1, window_bounds = array<i64: 128, 128>}, {pipeline_mode = #tpu.pipeline_mode<synchronous>, transform_indices = @transform_2, window_bounds = array<i64: 128, 128>}, {pipeline_mode = #tpu.pipeline_mode<synchronous>, transform_indices = @transform_3, window_bounds = array<i64: 128, 128>}, {transform_indices = @transform_4, window_bounds = array<i64: 128, 128>}, {transform_indices = @transform_5, window_bounds = array<i64: 128, 128>}, {pipeline_mode = #tpu.pipeline_mode<synchronous>, transform_indices = @transform_6, window_bounds = array<i64: 1, 128>}, {pipeline_mode = #tpu.pipeline_mode<synchronous>, transform_indices = @transform_7, window_bounds = array<i64: 1, 128>}, {pipeline_mode = #tpu.pipeline_mode<synchronous>, transform_indices = @transform_8, window_bounds = array<i64: 1, 128>}, {pipeline_mode = #tpu.pipeline_mode<synchronous>, transform_indices = @transform_9, window_bounds = array<i64: 1, 128>}]} {
    %c0 = arith.constant 0 : index
    %c0_0 = arith.constant 0 : index
    %0 = vector.load %arg1[%c0, %c0_0] : memref<128x128xbf16, #tpu.memory_space<vmem>>, vector<128x128xbf16>
    %c0_1 = arith.constant 0 : index
    %c0_2 = arith.constant 0 : index
    %1 = vector.load %arg3[%c0_1, %c0_2] : memref<128x128xbf16, #tpu.memory_space<vmem>>, vector<128x128xbf16>
    %cst = arith.constant dense<0.000000e+00> : vector<128x128xf32>
    %2 = tpu.matmul %0, %1, %cst {dimension_numbers = #tpu.dot_dimension_numbers<[1], [0], [0], [1], [0, 0, 1, 1], [], []>} : vector<128x128xbf16>, vector<128x128xbf16>, vector<128x128xf32> -> vector<128x128xf32>
    %c0_3 = arith.constant 0 : index
    %c0_4 = arith.constant 0 : index
    %3 = vector.load %arg5[%c0_3, %c0_4] : memref<128x128xf32, #tpu.memory_space<vmem>>, vector<128x128xf32>
    tpu.vector_store %arg5[%c0_3, %c0_4], %2 {strides = array<i32>} : memref<128x128xf32, #tpu.memory_space<vmem>>, vector<128x128xf32>,
    %c0_i32 = arith.constant 0 : i32
    %4 = arith.cmpi eq, %arg0, %c0_i32 : i32
    %5 = arith.extui %4 : i1 to i32
    %c0_i32_5 = arith.constant 0 : i32
    %6 = arith.cmpi ne, %5, %c0_i32_5 : i32
    scf.if %6 {
      %cst_35 = arith.constant 0.000000e+00 : f32
      %36 = vector.broadcast %cst_35 : f32 to vector<1x128xf32>
      %c0_36 = arith.constant 0 : index
      %c0_37 = arith.constant 0 : index
      %37 = vector.load %arg7[%c0_36, %c0_37] : memref<1x128xf32, #tpu.memory_space<vmem>>, vector<1x128xf32>
      tpu.vector_store %arg7[%c0_36, %c0_37], %36 {strides = array<i32>} : memref<1x128xf32, #tpu.memory_space<vmem>>, vector<1x128xf32>,
      %cst_38 = arith.constant 0.000000e+00 : f32
      %38 = vector.broadcast %cst_38 : f32 to vector<1x128xf32>
      %c0_39 = arith.constant 0 : index
      %c0_40 = arith.constant 0 : index
      %39 = vector.load %arg8[%c0_39, %c0_40] : memref<1x128xf32, #tpu.memory_space<vmem>>, vector<1x128xf32>
      tpu.vector_store %arg8[%c0_39, %c0_40], %38 {strides = array<i32>} : memref<1x128xf32, #tpu.memory_space<vmem>>, vector<1x128xf32>,
    } else {
    }
    %c0_6 = arith.constant 0 : index
    %c0_7 = arith.constant 0 : index
    %7 = vector.load %arg7[%c0_6, %c0_7] : memref<1x128xf32, #tpu.memory_space<vmem>>, vector<1x128xf32>
    %cst_8 = arith.constant dense<0.000000e+00> : vector<128xf32>
    %8 = vector.multi_reduction <add>, %2, %cst_8 [0] : vector<128x128xf32> to vector<128xf32>
    %9 = vector.shape_cast %8 : vector<128xf32> to vector<1x128xf32>
    %10 = arith.addf %7, %9 : vector<1x128xf32>
    %c0_9 = arith.constant 0 : index
    %c0_10 = arith.constant 0 : index
    %11 = vector.load %arg7[%c0_9, %c0_10] : memref<1x128xf32, #tpu.memory_space<vmem>>, vector<1x128xf32>
    tpu.vector_store %arg7[%c0_9, %c0_10], %10 {strides = array<i32>} : memref<1x128xf32, #tpu.memory_space<vmem>>, vector<1x128xf32>,
    %c0_11 = arith.constant 0 : index
    %c0_12 = arith.constant 0 : index
    %12 = vector.load %arg8[%c0_11, %c0_12] : memref<1x128xf32, #tpu.memory_space<vmem>>, vector<1x128xf32>
    %13 = arith.mulf %2, %2 : vector<128x128xf32>
    %cst_13 = arith.constant dense<0.000000e+00> : vector<128xf32>
    %14 = vector.multi_reduction <add>, %13, %cst_13 [0] : vector<128x128xf32> to vector<128xf32>
    %15 = vector.shape_cast %14 : vector<128xf32> to vector<1x128xf32>
    %16 = arith.addf %12, %15 : vector<1x128xf32>
    %c0_14 = arith.constant 0 : index
    %c0_15 = arith.constant 0 : index
    %17 = vector.load %arg8[%c0_14, %c0_15] : memref<1x128xf32, #tpu.memory_space<vmem>>, vector<1x128xf32>
    tpu.vector_store %arg8[%c0_14, %c0_15], %16 {strides = array<i32>} : memref<1x128xf32, #tpu.memory_space<vmem>>, vector<1x128xf32>,
    %c0_16 = arith.constant 0 : index
    %c0_17 = arith.constant 0 : index
    %18 = vector.load %arg2[%c0_16, %c0_17] : memref<128x128xbf16, #tpu.memory_space<vmem>>, vector<128x128xbf16>
    %c0_18 = arith.constant 0 : index
    %c0_19 = arith.constant 0 : index
    %19 = vector.load %arg4[%c0_18, %c0_19] : memref<128x128xbf16, #tpu.memory_space<vmem>>, vector<128x128xbf16>
    %cst_20 = arith.constant dense<0.000000e+00> : vector<128x128xf32>
    %20 = tpu.matmul %18, %19, %cst_20 {dimension_numbers = #tpu.dot_dimension_numbers<[1], [0], [0], [1], [0, 0, 1, 1], [], []>} : vector<128x128xbf16>, vector<128x128xbf16>, vector<128x128xf32> -> vector<128x128xf32>
    %c0_21 = arith.constant 0 : index
    %c0_22 = arith.constant 0 : index
    %21 = vector.load %arg6[%c0_21, %c0_22] : memref<128x128xf32, #tpu.memory_space<vmem>>, vector<128x128xf32>
    tpu.vector_store %arg6[%c0_21, %c0_22], %20 {strides = array<i32>} : memref<128x128xf32, #tpu.memory_space<vmem>>, vector<128x128xf32>,
    %c0_i32_23 = arith.constant 0 : i32
    %22 = arith.cmpi eq, %arg0, %c0_i32_23 : i32
    %23 = arith.extui %22 : i1 to i32
    %c0_i32_24 = arith.constant 0 : i32
    %24 = arith.cmpi ne, %23, %c0_i32_24 : i32
    scf.if %24 {
      %cst_35 = arith.constant 0.000000e+00 : f32
      %36 = vector.broadcast %cst_35 : f32 to vector<1x128xf32>
      %c0_36 = arith.constant 0 : index
      %c0_37 = arith.constant 0 : index
      %37 = vector.load %arg9[%c0_36, %c0_37] : memref<1x128xf32, #tpu.memory_space<vmem>>, vector<1x128xf32>
      tpu.vector_store %arg9[%c0_36, %c0_37], %36 {strides = array<i32>} : memref<1x128xf32, #tpu.memory_space<vmem>>, vector<1x128xf32>,
      %cst_38 = arith.constant 0.000000e+00 : f32
      %38 = vector.broadcast %cst_38 : f32 to vector<1x128xf32>
      %c0_39 = arith.constant 0 : index
      %c0_40 = arith.constant 0 : index
      %39 = vector.load %arg10[%c0_39, %c0_40] : memref<1x128xf32, #tpu.memory_space<vmem>>, vector<1x128xf32>
      tpu.vector_store %arg10[%c0_39, %c0_40], %38 {strides = array<i32>} : memref<1x128xf32, #tpu.memory_space<vmem>>, vector<1x128xf32>,
    } else {
    }
    %c0_25 = arith.constant 0 : index
    %c0_26 = arith.constant 0 : index
    %25 = vector.load %arg9[%c0_25, %c0_26] : memref<1x128xf32, #tpu.memory_space<vmem>>, vector<1x128xf32>
    %cst_27 = arith.constant dense<0.000000e+00> : vector<128xf32>
    %26 = vector.multi_reduction <add>, %20, %cst_27 [0] : vector<128x128xf32> to vector<128xf32>
    %27 = vector.shape_cast %26 : vector<128xf32> to vector<1x128xf32>
    %28 = arith.addf %25, %27 : vector<1x128xf32>
    %c0_28 = arith.constant 0 : index
    %c0_29 = arith.constant 0 : index
    %29 = vector.load %arg9[%c0_28, %c0_29] : memref<1x128xf32, #tpu.memory_space<vmem>>, vector<1x128xf32>
    tpu.vector_store %arg9[%c0_28, %c0_29], %28 {strides = array<i32>} : memref<1x128xf32, #tpu.memory_space<vmem>>, vector<1x128xf32>,
    %c0_30 = arith.constant 0 : index
    %c0_31 = arith.constant 0 : index
    %30 = vector.load %arg10[%c0_30, %c0_31] : memref<1x128xf32, #tpu.memory_space<vmem>>, vector<1x128xf32>
    %31 = arith.mulf %20, %20 : vector<128x128xf32>
    %cst_32 = arith.constant dense<0.000000e+00> : vector<128xf32>
    %32 = vector.multi_reduction <add>, %31, %cst_32 [0] : vector<128x128xf32> to vector<128xf32>
    %33 = vector.shape_cast %32 : vector<128xf32> to vector<1x128xf32>
    %34 = arith.addf %30, %33 : vector<1x128xf32>
    %c0_33 = arith.constant 0 : index
    %c0_34 = arith.constant 0 : index
    %35 = vector.load %arg10[%c0_33, %c0_34] : memref<1x128xf32, #tpu.memory_space<vmem>>, vector<1x128xf32>
    tpu.vector_store %arg10[%c0_33, %c0_34], %34 {strides = array<i32>} : memref<1x128xf32, #tpu.memory_space<vmem>>, vector<1x128xf32>,
    return
  }
  func.func @transform_0(%arg0: i32) -> (i32, i32) {
    %c0_i32 = arith.constant 0 : i32
    %c0_i32_0 = arith.constant 0 : i32
    return %arg0, %c0_i32 : i32, i32
  }
  func.func @transform_1(%arg0: i32) -> (i32, i32) {
    %c0_i32 = arith.constant 0 : i32
    %c0_i32_0 = arith.constant 0 : i32
    return %arg0, %c0_i32 : i32, i32
  }
  func.func @transform_2(%arg0: i32) -> (i32, i32) {
    %c0_i32 = arith.constant 0 : i32
    %c0_i32_0 = arith.constant 0 : i32
    %c0_i32_1 = arith.constant 0 : i32
    return %c0_i32, %c0_i32_0 : i32, i32
  }
  func.func @transform_3(%arg0: i32) -> (i32, i32) {
    %c0_i32 = arith.constant 0 : i32
    %c0_i32_0 = arith.constant 0 : i32
    %c0_i32_1 = arith.constant 0 : i32
    return %c0_i32, %c0_i32_0 : i32, i32
  }
  func.func @transform_4(%arg0: i32) -> (i32, i32) {
    %c0_i32 = arith.constant 0 : i32
    %c0_i32_0 = arith.constant 0 : i32
    return %arg0, %c0_i32 : i32, i32
  }
  func.func @transform_5(%arg0: i32) -> (i32, i32) {
    %c0_i32 = arith.constant 0 : i32
    %c0_i32_0 = arith.constant 0 : i32
    return %arg0, %c0_i32 : i32, i32
  }
  func.func @transform_6(%arg0: i32) -> (i32, i32) {
    %c0_i32 = arith.constant 0 : i32
    %c0_i32_0 = arith.constant 0 : i32
    %c0_i32_1 = arith.constant 0 : i32
    return %c0_i32, %c0_i32_0 : i32, i32
  }
  func.func @transform_7(%arg0: i32) -> (i32, i32) {
    %c0_i32 = arith.constant 0 : i32
    %c0_i32_0 = arith.constant 0 : i32
    %c0_i32_1 = arith.constant 0 : i32
    return %c0_i32, %c0_i32_0 : i32, i32
  }
  func.func @transform_8(%arg0: i32) -> (i32, i32) {
    %c0_i32 = arith.constant 0 : i32
    %c0_i32_0 = arith.constant 0 : i32
    %c0_i32_1 = arith.constant 0 : i32
    return %c0_i32, %c0_i32_0 : i32, i32
  }
  func.func @transform_9(%arg0: i32) -> (i32, i32) {
    %c0_i32 = arith.constant 0 : i32
    %c0_i32_0 = arith.constant 0 : i32
    %c0_i32_1 = arith.constant 0 : i32
    return %c0_i32, %c0_i32_0 : i32, i32
  }
}

</mosaic_0001>

<bundles_post_ra>
// kernel: tpu_custom_call.1
= control target key start
LH: loop header
LB: loop body
LE: loop exit
PB: predicated region body
PF: predicated region fallthrough
CT: control target
= control target key end

     0   :  { %15 = vsyncpa [#allocation3], 0  ;;  %s1310_s0 = inlined_call_operand.hbm [shape: bf16[128,128], index: 0, kind: input, shape index: {}]   ;;  %s1311_s1 = inlined_call_operand.hbm [shape: bf16[128,128], index: 1, kind: input, shape index: {}]   ;;  %s1312_s2 = inlined_call_operand.hbm [shape: bf16[128,128], index: 2, kind: input, shape index: {}]   ;;  %s1313_s3 = inlined_call_operand.hbm [shape: bf16[128,128], index: 3, kind: input, shape index: {}]   ;;  %s1314_s4 = inlined_call_operand.hbm [shape: f32[128,128], index: 4, kind: output, shape index: {0}]   ;;  %s1315_s5 = inlined_call_operand.hbm [shape: f32[128,128], index: 5, kind: output, shape index: {1}]   ;;  %s1316_s6 = inlined_call_operand.hbm [shape: f32[1,128], index: 6, kind: output, shape index: {2}]   ;;  %s1317_s7 = inlined_call_operand.hbm [shape: f32[1,128], index: 7, kind: output, shape index: {3}]   ;;  %s1318_s8 = inlined_call_operand.hbm [shape: f32[1,128], index: 8, kind: output, shape index: {4}]   ;;  %s1319_s9 = inlined_call_operand.hbm [shape: f32[1,128], index: 9, kind: output, shape index: {5}]  }
   0x1   :  { %16 = vsyncpa [#allocation6], 0 }
   0x2   :  { %17 = vsyncpa [#allocation9], 0 }
   0x3   :  { %18 = vsyncpa [#allocation4], 0 }
   0x4   :  { %19 = vsyncpa [#allocation12], 0 }
   0x5   :  { %20 = vsyncpa [#allocation15], 0 }
   0x6   :  { %21 = vsyncpa [#allocation18], 0  ;;  %s1182_s30 = smov [#allocation5]   ;;  %s1183_s11 = smov [#allocation2]  }
   0x7   :  { %s39_s10 = sshll.u32 %s1182_s30, 4  ;;  %s27_s12 = sshll.u32 %s1183_s11, 4  ;;  %s40_s10 = int_to_ptr.vmem [resolvable:$true] %s39_s10  ;;  %s28_s12 = int_to_ptr.vmem [resolvable:$true] %s27_s12 }
   0x8   :  { %s976_s13 = scalar_lea.vmem %s40_s10, 1024  ;;  %p981_p1 = scmp.lt.s32.totalorder %s40_s10, %s40_s10 }
   0x9   :  { %p977_p0 = scmp.ne.s32.totalorder %s40_s10, %s976_s13  ;;  %p982_p2 = scmp.lt.s32.totalorder %s976_s13, %s976_s13 }
   0xb   :  { %p983_p3 = por %p982_p2, %p981_p1 }
   0xd   :  { %p984_p4 = pnand %p983_p3, %p977_p0 }
   0xf   :  { %987 = shalt.err (!%p984_p4)
}
  0x10   :  { %s1184_s14 = smov 64   ;;  %s1185_s15 = smov 4  }
  0x11   :  { %45 = dma.hbm_to_vmem [thread:$0]  %s1311_s1, 1024, %s40_s10, [#allocation6], %s1184_s14, %s1184_s14, %s1185_s15  }
  0x12   :  { %s996_s18 = scalar_lea.vmem %s28_s12, 1024  ;;  %p1001_p6 = scmp.lt.s32.totalorder %s28_s12, %s28_s12 }
  0x13   :  { %p997_p5 = scmp.ne.s32.totalorder %s28_s12, %s996_s18  ;;  %p1002_p7 = scmp.lt.s32.totalorder %s996_s18, %s996_s18 }
  0x15   :  { %p1003_p8 = por %p1002_p7, %p1001_p6 }
  0x17   :  { %p1004_p9 = pnand %p1003_p8, %p997_p5 }
  0x19   :  { %1007 = shalt.err (!%p1004_p9)
}
  0x1a   :  { %33 = dma.hbm_to_vmem [thread:$0]  %s1310_s0, 1024, %s28_s12, [#allocation3], %s1184_s14, %s1184_s14, %s1185_s15  }
  0x1b   :  { %s1186_s21 = smov [#allocation7]   ;;  %s1187_s23 = smov [#allocation8]  }
  0x1c   :  { %s51_s22 = sshll.u32 %s1186_s21, 4  ;;  %s63_s24 = sshll.u32 %s1187_s23, 4  ;;  %s52_s22 = int_to_ptr.vmem [resolvable:$true] %s51_s22  ;;  %s64_s24 = int_to_ptr.vmem [resolvable:$true] %s63_s24 }
  0x1d   :  { %s1016_s1 = scalar_lea.vmem %s52_s22, 1024  ;;  %p1021_p11 = scmp.lt.s32.totalorder %s52_s22, %s52_s22 }
  0x1e   :  { %p1017_p10 = scmp.ne.s32.totalorder %s52_s22, %s1016_s1  ;;  %p1022_p12 = scmp.lt.s32.totalorder %s1016_s1, %s1016_s1 }
  0x20   :  { %p1023_p13 = por %p1022_p12, %p1021_p11 }
  0x22   :  { %p1024_p0 = pnand %p1023_p13, %p1017_p10 }
  0x24   :  { %1027 = shalt.err (!%p1024_p0)
}
  0x25   :  { %57 = dma.hbm_to_vmem [thread:$0]  %s1312_s2, 1024, %s52_s22, [#allocation6], %s1184_s14, %s1184_s14, %s1185_s15  }
  0x26   :  { %s1036_s0 = scalar_lea.vmem %s64_s24, 1024  ;;  %p1041_p2 = scmp.lt.s32.totalorder %s64_s24, %s64_s24 }
  0x27   :  { %p1037_p1 = scmp.ne.s32.totalorder %s64_s24, %s1036_s0  ;;  %p1042_p3 = scmp.lt.s32.totalorder %s1036_s0, %s1036_s0 }
  0x29   :  { %p1043_p4 = por %p1042_p3, %p1041_p2 }
  0x2b   :  { %p1044_p5 = pnand %p1043_p4, %p1037_p1 }
  0x2d   :  { %1047 = shalt.err (!%p1044_p5)
}
  0x2e   :  { %69 = dma.hbm_to_vmem [thread:$0]  %s1313_s3, 1024, %s64_s24, [#allocation9], %s1184_s14, %s1184_s14, %s1185_s15  }
  0x2f   :  { %1168 = dma.done.wait [#allocation3], 1024  }
  0x30   :  { %1169 = vsyncadd [#allocation3], 4294966272 }
  0x31   :  { %1170 = dma.done.wait [#allocation6], 2048  }
  0x32   :  { %1171 = vsyncadd [#allocation6], 4294965248 }
  0x33   :  { %1172 = dma.done.wait [#allocation9], 1024  }
  0x34   :  { %1173 = vsyncadd [#allocation9], 4294966272  ;;  %v936_v0 = vld [vmem:[#allocation7 + $0x38] sm:$0xff]   ;;  %v938_v2 = vld [vmem:[#allocation7 + $0x30] sm:$0xff]   ;;  %v1188_v32 = vmov 0.0   ;;  %s1189_s2 = smov [#allocation10]  }
  0x35   :  { %v937_v1 = vld [vmem:[#allocation8 + $0x38] sm:$0xff]   ;;  %857 = vmatprep.subr.bf16.mxu0 %v936_v0  ;;  %v939_v3 = vld [vmem:[#allocation8 + $0x30] sm:$0xff]   ;;  %v940_v4 = vld [vmem:[#allocation7 + $0x28] sm:$0xff]   ;;  %329 = vst [vmem:[#allocation14] sm:$0x1] %v1188_v32  ;;  %s709_s3 = sshll.u32 %s1189_s2, 4  ;;  %s710_s3 = int_to_ptr.vmem [resolvable:$true] %s709_s3 }
  0x36   :  { %889 = vmatprep.subr.bf16.mxu1 %v937_v1  ;;  %858 = vmatpush3.bf16.msra.mxu0 %v936_v0  ;;  %v941_v5 = vld [vmem:[#allocation8 + $0x28] sm:$0xff]   ;;  %v942_v6 = vld [vmem:[#allocation7 + $0x20] sm:$0xff]   ;;  %v944_v8 = vld [vmem:[#allocation7 + $0x18] sm:$0xff]   ;;  %328 = vst [vmem:[#allocation13] sm:$0x1] %v1188_v32  ;;  %s1190_s29 = smov [#allocation11]   ;;  %p1053_p7 = scmp.lt.s32.totalorder %s710_s3, %s710_s3 }
  0x37   :  { %890 = vmatpush3.bf16.msra.mxu1 %v937_v1  ;;  %859 = vmatprep.subr.bf16.mxu0 %v938_v2  ;;  %v943_v7 = vld [vmem:[#allocation8 + $0x20] sm:$0xff]   ;;  %v945_v9 = vld [vmem:[#allocation8 + $0x18] sm:$0xff]   ;;  %v946_v10 = vld [vmem:[#allocation7 + $0x10] sm:$0xff]   ;;  %638 = vst [vmem:[#allocation16] sm:$0x1] %v1188_v32  ;;  %s721_s30 = sshll.u32 %s1190_s29, 4  ;;  %s1274_s30 = int_to_ptr.vmem [resolvable:$true] %s721_s30 }
  0x38   :  { %891 = vmatprep.subr.bf16.mxu1 %v939_v3  ;;  %v947_v11 = vld [vmem:[#allocation8 + $0x10] sm:$0xff]   ;;  %v952_v12 = vld [vmem:[#allocation2] sm:$0xff]   ;;  %v948_v14 = vld [vmem:[#allocation7 + $0x8] sm:$0xff]   ;;  %639 = vst [vmem:[#allocation17] sm:$0x1] %v1188_v32  ;;  %s1048_s10 = scalar_lea.vmem %s710_s3, 2048 }
  0x39   :  { %v953_v13 = vld [vmem:[#allocation5] sm:$0xff]   ;;  %873 = vmatprep.mubr.bf16.mxu0 %v952_v12  ;;  %v949_v15 = vld [vmem:[#allocation8 + $0x8] sm:$0xff]   ;;  %v956_v20 = vld [vmem:[#allocation2 + $0x10] sm:$0xff]   ;;  %p1049_p6 = scmp.ne.s32.totalorder %s710_s3, %s1048_s10  ;;  %p1054_p8 = scmp.lt.s32.totalorder %s1048_s10, %s1048_s10 }
  0x3a   :  { %860 = vmatpush3.bf16.msra.mxu0 %v938_v2  ;;  %905 = vmatprep.mubr.bf16.mxu1 %v953_v13  ;;  %v950_v16 = vld [vmem:[#allocation7] sm:$0xff]   ;;  %v954_v18 = vld [vmem:[#allocation2 + $0x8] sm:$0xff]   ;;  %v957_v21 = vld [vmem:[#allocation5 + $0x10] sm:$0xff]  }
  0x3b   :  { %892 = vmatpush3.bf16.msra.mxu1 %v939_v3  ;;  %861 = vmatprep.subr.bf16.mxu0 %v940_v4  ;;  %v951_v17 = vld [vmem:[#allocation8] sm:$0xff]   ;;  %v955_v19 = vld [vmem:[#allocation5 + $0x8] sm:$0xff]   ;;  %v958_v22 = vld [vmem:[#allocation2 + $0x18] sm:$0xff]   ;;  %p1055_p9 = por %p1054_p8, %p1053_p7 }
  0x3c   :  { %893 = vmatprep.subr.bf16.mxu1 %v941_v5  ;;  %v959_v23 = vld [vmem:[#allocation5 + $0x18] sm:$0xff]   ;;  %v960_v24 = vld [vmem:[#allocation2 + $0x20] sm:$0xff]   ;;  %v962_v26 = vld [vmem:[#allocation2 + $0x28] sm:$0xff]  }
  0x3d   :  { %v961_v25 = vld [vmem:[#allocation5 + $0x20] sm:$0xff]   ;;  %v963_v27 = vld [vmem:[#allocation5 + $0x28] sm:$0xff]   ;;  %v964_v28 = vld [vmem:[#allocation2 + $0x30] sm:$0xff]   ;;  %p1056_p10 = pnand %p1055_p9, %p1049_p6 }
  0x3e   :  { %862 = vmatpush3.bf16.msra.mxu0 %v940_v4  ;;  %v965_v29 = vld [vmem:[#allocation5 + $0x30] sm:$0xff]   ;;  %v966_v30 = vld [vmem:[#allocation2 + $0x38] sm:$0xff]  }
  0x3f   :  { %894 = vmatpush3.bf16.msra.mxu1 %v941_v5  ;;  %863 = vmatprep.subr.bf16.mxu0 %v942_v6  ;;  %v967_v31 = vld [vmem:[#allocation5 + $0x38] sm:$0xff]  }
  0x40   :  { %895 = vmatprep.subr.bf16.mxu1 %v943_v7 }
  0x42   :  { %864 = vmatpush3.bf16.msra.mxu0 %v942_v6 }
  0x43   :  { %896 = vmatpush3.bf16.msra.mxu1 %v943_v7  ;;  %865 = vmatprep.subr.bf16.mxu0 %v944_v8 }
  0x44   :  { %897 = vmatprep.subr.bf16.mxu1 %v945_v9 }
  0x46   :  { %866 = vmatpush3.bf16.msra.mxu0 %v944_v8 }
  0x47   :  { %898 = vmatpush3.bf16.msra.mxu1 %v945_v9  ;;  %867 = vmatprep.subr.bf16.mxu0 %v946_v10 }
  0x48   :  { %899 = vmatprep.subr.bf16.mxu1 %v947_v11 }
  0x4a   :  { %868 = vmatpush3.bf16.msra.mxu0 %v946_v10 }
  0x4b   :  { %900 = vmatpush3.bf16.msra.mxu1 %v947_v11  ;;  %869 = vmatprep.subr.bf16.mxu0 %v948_v14 }
  0x4c   :  { %901 = vmatprep.subr.bf16.mxu1 %v949_v15 }
  0x4e   :  { %870 = vmatpush3.bf16.msra.mxu0 %v948_v14 }
  0x4f   :  { %902 = vmatpush3.bf16.msra.mxu1 %v949_v15  ;;  %871 = vmatprep.subr.bf16.mxu0 %v950_v16 }
  0x50   :  { %903 = vmatprep.subr.bf16.mxu1 %v951_v17 }
  0x52   :  { %872 = vmatpush3.bf16.msra.mxu0 %v950_v16 }
  0x53   :  { %904 = vmatpush3.bf16.msra.mxu1 %v951_v17 }
  0x55   :  { %874 = vmatmul.mubr.bf16.vlgmr.msra.gmra.mxu0 %v954_v18 }
  0x56   :  { %906 = vmatmul.mubr.bf16.vlgmr.msra.gmra.mxu1 %v955_v19  ;;  %877 = vmatprep.mubr.bf16.mxu0 %v956_v20 }
  0x57   :  { %909 = vmatprep.mubr.bf16.mxu1 %v957_v21 }
  0x5d   :  { %878 = vmatmul.mubr.bf16.gmra.mxu0 %v958_v22 }
  0x5e   :  { %910 = vmatmul.mubr.bf16.gmra.mxu1 %v959_v23  ;;  %881 = vmatprep.mubr.bf16.mxu0 %v960_v24 }
  0x5f   :  { %913 = vmatprep.mubr.bf16.mxu1 %v961_v25 }
  0x65   :  { %882 = vmatmul.mubr.bf16.gmra.mxu0 %v962_v26 }
  0x66   :  { %914 = vmatmul.mubr.bf16.gmra.mxu1 %v963_v27  ;;  %885 = vmatprep.mubr.bf16.mxu0 %v964_v28 }
  0x67   :  { %917 = vmatprep.mubr.bf16.mxu1 %v965_v29 }
  0x6d   :  { %886 = vmatmul.mubr.bf16.gmra.mxu0 %v966_v30 }
  0x6e   :  { %918 = vmatmul.mubr.bf16.gmra.mxu1 %v967_v31 }
 0x115   :  { %v875_v33 = vpop.f32.mrf.mxu0 }
 0x116   :  { %310 = vst [vmem:[#allocation10 + $0x10] sm:$0xff] %v875_v33  ;;  %v907_v34 = vpop.f32.mrf.mxu1  ;;  %v357_v48 = vmul.f32 %v875_v33, %v875_v33 }
 0x117   :  { %621 = vst [vmem:[#allocation11 + $0x10] sm:$0xff] %v907_v34  ;;  %v245_v35 = vpop.f32.mrf.mxu0  ;;  %v667_v52 = vmul.f32 %v907_v34, %v907_v34 }
 0x118   :  { %308 = vst [vmem:[#allocation10] sm:$0xff] %v245_v35  ;;  %v556_v36 = vpop.f32.mrf.mxu1  ;;  %v355_v40 = vmul.f32 %v245_v35, %v245_v35 }
 0x119   :  { %619 = vst [vmem:[#allocation11] sm:$0xff] %v556_v36  ;;  %v876_v37 = vpop.f32.mrf.mxu0  ;;  %v665_v44 = vmul.f32 %v556_v36, %v556_v36 }
 0x11a   :  { %311 = vst [vmem:[#allocation10 + $0x18] sm:$0xff] %v876_v37  ;;  %v908_v38 = vpop.f32.mrf.mxu1  ;;  %v358_v56 = vmul.f32 %v876_v37, %v876_v37 }
 0x11b   :  { %622 = vst [vmem:[#allocation11 + $0x18] sm:$0xff] %v908_v38  ;;  %v248_v39 = vpop.f32.mrf.mxu0  ;;  %v668_v60 = vmul.f32 %v908_v38, %v908_v38 }
 0x11c   :  { %309 = vst [vmem:[#allocation10 + $0x8] sm:$0xff] %v248_v39  ;;  %v331_v41 = vadd.f32 %v248_v39, %v245_v35  ;;  %v356_v42 = vmul.f32 %v248_v39, %v248_v39  ;;  %v559_v43 = vpop.f32.mrf.mxu1 }
 0x11d   :  { %620 = vst [vmem:[#allocation11 + $0x8] sm:$0xff] %v559_v43  ;;  %v641_v45 = vadd.f32 %v559_v43, %v556_v36  ;;  %v666_v46 = vmul.f32 %v559_v43, %v559_v43  ;;  %v879_v47 = vpop.f32.mrf.mxu0 }
 0x11e   :  { %v332_v49 = vadd.f32 %v875_v33, %v331_v41  ;;  %v371_v50 = vadd.f32 %v356_v42, %v355_v40  ;;  %314 = vst [vmem:[#allocation10 + $0x30] sm:$0xff] %v879_v47  ;;  %v911_v51 = vpop.f32.mrf.mxu1  ;;  %v361_v16 = vmul.f32 %v879_v47, %v879_v47 }
 0x11f   :  { %v642_v53 = vadd.f32 %v907_v34, %v641_v45  ;;  %v681_v54 = vadd.f32 %v666_v46, %v665_v44  ;;  %625 = vst [vmem:[#allocation11 + $0x30] sm:$0xff] %v911_v51  ;;  %v261_v55 = vpop.f32.mrf.mxu0  ;;  %v671_v20 = vmul.f32 %v911_v51, %v911_v51 }
 0x120   :  { %v372_v57 = vadd.f32 %v371_v50, %v357_v48  ;;  %312 = vst [vmem:[#allocation10 + $0x20] sm:$0xff] %v261_v55  ;;  %v333_v58 = vadd.f32 %v876_v37, %v332_v49  ;;  %v572_v59 = vpop.f32.mrf.mxu1  ;;  %v359_v1 = vmul.f32 %v261_v55, %v261_v55 }
 0x121   :  { %v682_v61 = vadd.f32 %v681_v54, %v667_v52  ;;  %623 = vst [vmem:[#allocation11 + $0x20] sm:$0xff] %v572_v59  ;;  %v643_v62 = vadd.f32 %v908_v38, %v642_v53  ;;  %v880_v63 = vpop.f32.mrf.mxu0  ;;  %v669_v5 = vmul.f32 %v572_v59, %v572_v59 }
 0x122   :  { %v334_v0 = vadd.f32 %v333_v58, %v261_v55  ;;  %v373_v2 = vadd.f32 %v372_v57, %v358_v56  ;;  %315 = vst [vmem:[#allocation10 + $0x38] sm:$0xff] %v880_v63  ;;  %v912_v3 = vpop.f32.mrf.mxu1  ;;  %v362_v24 = vmul.f32 %v880_v63, %v880_v63 }
 0x123   :  { %v644_v4 = vadd.f32 %v643_v62, %v572_v59  ;;  %v683_v6 = vadd.f32 %v682_v61, %v668_v60  ;;  %626 = vst [vmem:[#allocation11 + $0x38] sm:$0xff] %v912_v3  ;;  %v264_v7 = vpop.f32.mrf.mxu0  ;;  %v672_v28 = vmul.f32 %v912_v3, %v912_v3 }
 0x124   :  { %v374_v8 = vadd.f32 %v373_v2, %v359_v1  ;;  %313 = vst [vmem:[#allocation10 + $0x28] sm:$0xff] %v264_v7  ;;  %v335_v9 = vadd.f32 %v334_v0, %v264_v7  ;;  %v360_v10 = vmul.f32 %v264_v7, %v264_v7  ;;  %v575_v11 = vpop.f32.mrf.mxu1 }
 0x125   :  { %v684_v12 = vadd.f32 %v683_v6, %v669_v5  ;;  %624 = vst [vmem:[#allocation11 + $0x28] sm:$0xff] %v575_v11  ;;  %v645_v13 = vadd.f32 %v644_v4, %v575_v11  ;;  %v670_v14 = vmul.f32 %v575_v11, %v575_v11  ;;  %v883_v15 = vpop.f32.mrf.mxu0 }
 0x126   :  { %v336_v17 = vadd.f32 %v879_v47, %v335_v9  ;;  %v375_v18 = vadd.f32 %v374_v8, %v360_v10  ;;  %318 = vst [vmem:[#allocation10 + $0x50] sm:$0xff] %v883_v15  ;;  %v915_v19 = vpop.f32.mrf.mxu1  ;;  %v365_v48 = vmul.f32 %v883_v15, %v883_v15 }
 0x127   :  { %v646_v21 = vadd.f32 %v911_v51, %v645_v13  ;;  %v685_v22 = vadd.f32 %v684_v12, %v670_v14  ;;  %629 = vst [vmem:[#allocation11 + $0x50] sm:$0xff] %v915_v19  ;;  %v277_v23 = vpop.f32.mrf.mxu0  ;;  %v675_v52 = vmul.f32 %v915_v19, %v915_v19 }
 0x128   :  { %v376_v25 = vadd.f32 %v375_v18, %v361_v16  ;;  %316 = vst [vmem:[#allocation10 + $0x40] sm:$0xff] %v277_v23  ;;  %v337_v26 = vadd.f32 %v880_v63, %v336_v17  ;;  %v588_v27 = vpop.f32.mrf.mxu1  ;;  %v363_v33 = vmul.f32 %v277_v23, %v277_v23 }
 0x129   :  { %v686_v29 = vadd.f32 %v685_v22, %v671_v20  ;;  %627 = vst [vmem:[#allocation11 + $0x40] sm:$0xff] %v588_v27  ;;  %v647_v30 = vadd.f32 %v912_v3, %v646_v21  ;;  %v884_v31 = vpop.f32.mrf.mxu0  ;;  %v673_v37 = vmul.f32 %v588_v27, %v588_v27 }
 0x12a   :  { %v338_v32 = vadd.f32 %v337_v26, %v277_v23  ;;  %v377_v34 = vadd.f32 %v376_v25, %v362_v24  ;;  %319 = vst [vmem:[#allocation10 + $0x58] sm:$0xff] %v884_v31  ;;  %v916_v35 = vpop.f32.mrf.mxu1  ;;  %v366_v56 = vmul.f32 %v884_v31, %v884_v31 }
 0x12b   :  { %v648_v36 = vadd.f32 %v647_v30, %v588_v27  ;;  %v687_v38 = vadd.f32 %v686_v29, %v672_v28  ;;  %630 = vst [vmem:[#allocation11 + $0x58] sm:$0xff] %v916_v35  ;;  %v280_v39 = vpop.f32.mrf.mxu0  ;;  %v676_v60 = vmul.f32 %v916_v35, %v916_v35 }
 0x12c   :  { %v378_v40 = vadd.f32 %v377_v34, %v363_v33  ;;  %317 = vst [vmem:[#allocation10 + $0x48] sm:$0xff] %v280_v39  ;;  %v339_v41 = vadd.f32 %v338_v32, %v280_v39  ;;  %v364_v42 = vmul.f32 %v280_v39, %v280_v39  ;;  %v591_v43 = vpop.f32.mrf.mxu1 }
 0x12d   :  { %v688_v44 = vadd.f32 %v687_v38, %v673_v37  ;;  %628 = vst [vmem:[#allocation11 + $0x48] sm:$0xff] %v591_v43  ;;  %v649_v45 = vadd.f32 %v648_v36, %v591_v43  ;;  %v674_v46 = vmul.f32 %v591_v43, %v591_v43  ;;  %v887_v47 = vpop.f32.mrf.mxu0 }
 0x12e   :  { %v340_v49 = vadd.f32 %v883_v15, %v339_v41  ;;  %v379_v50 = vadd.f32 %v378_v40, %v364_v42  ;;  %322 = vst [vmem:[#allocation10 + $0x70] sm:$0xff] %v887_v47  ;;  %v1271_v51 = vpop.f32.mrf.mxu1 }
 0x12f   :  { %v650_v53 = vadd.f32 %v915_v19, %v649_v45  ;;  %v689_v54 = vadd.f32 %v688_v44, %v674_v46  ;;  %633 = vst [vmem:[#allocation11 + $0x70] sm:$0xff] %v1271_v51  ;;  %v293_v55 = vpop.f32.mrf.mxu0 }
 0x130   :  { %v380_v57 = vadd.f32 %v379_v50, %v365_v48  ;;  %320 = vst [vmem:[#allocation10 + $0x60] sm:$0xff] %v293_v55  ;;  %v341_v58 = vadd.f32 %v884_v31, %v340_v49  ;;  %v604_v59 = vpop.f32.mrf.mxu1  ;;  %v367_v1 = vmul.f32 %v293_v55, %v293_v55 }
 0x131   :  { %v690_v61 = vadd.f32 %v689_v54, %v675_v52  ;;  %631 = vst [vmem:[#allocation11 + $0x60] sm:$0xff] %v604_v59  ;;  %v651_v62 = vadd.f32 %v916_v35, %v650_v53  ;;  %v888_v63 = vpop.f32.mrf.mxu0  ;;  %v677_v5 = vmul.f32 %v604_v59, %v604_v59 }
 0x132   :  { %v342_v0 = vadd.f32 %v341_v58, %v293_v55  ;;  %v381_v2 = vadd.f32 %v380_v57, %v366_v56  ;;  %323 = vst [vmem:[#allocation10 + $0x78] sm:$0xff] %v888_v63  ;;  %v920_v3 = vpop.f32.mrf.mxu1 }
 0x133   :  { %v652_v4 = vadd.f32 %v651_v62, %v604_v59  ;;  %v691_v6 = vadd.f32 %v690_v61, %v676_v60  ;;  %634 = vst [vmem:[#allocation11 + $0x78] sm:$0xff] %v920_v3  ;;  %v296_v7 = vpop.f32.mrf.mxu0 }
 0x134   :  { %v382_v8 = vadd.f32 %v381_v2, %v367_v1  ;;  %321 = vst [vmem:[#allocation10 + $0x68] sm:$0xff] %v296_v7  ;;  %v343_v9 = vadd.f32 %v342_v0, %v296_v7  ;;  %v368_v10 = vmul.f32 %v296_v7, %v296_v7  ;;  %v607_v11 = vpop.f32.mrf.mxu1 }
 0x135   :  { %v692_v12 = vadd.f32 %v691_v6, %v677_v5  ;;  %632 = vst [vmem:[#allocation11 + $0x68] sm:$0xff] %v607_v11  ;;  %v653_v13 = vadd.f32 %v652_v4, %v607_v11  ;;  %v678_v14 = vmul.f32 %v607_v11, %v607_v11 }
 0x136   :  { %1059 = shalt.err (!%p1056_p10)
}
 0x137   :  { %s1191_s11 = smov 128   ;;  %s1192_s12 = smov 8   ;;  %v369_v15 = vmul.f32 %v887_v47, %v887_v47  ;;  %v344_v16 = vadd.f32 %v887_v47, %v343_v9  ;;  %v383_v17 = vadd.f32 %v382_v8, %v368_v10 }
 0x138   :  { %715 = dma.vmem_to_hbm [thread:$0]  %s710_s3, 2048, %s1314_s4, [#allocation4], %s1191_s11, %s1191_s11, %s1192_s12  }
 0x139   :  { %s1068_s15 = scalar_lea.vmem %s1274_s30, 2048  ;;  %p1073_p12 = scmp.lt.s32.totalorder %s1274_s30, %s1274_s30 }
 0x13a   :  { %p1069_p11 = scmp.ne.s32.totalorder %s1274_s30, %s1068_s15  ;;  %p1074_p13 = scmp.lt.s32.totalorder %s1068_s15, %s1068_s15 }
 0x13c   :  { %p1075_p0 = por %p1074_p13, %p1073_p12 }
 0x13e   :  { %p1076_p1 = pnand %p1075_p0, %p1069_p11 }
 0x140   :  { %1079 = shalt.err (!%p1076_p1)
}
 0x141   :  { %727 = dma.vmem_to_hbm [thread:$0]  %s1274_s30, 2048, %s1315_s5, [#allocation12], %s1191_s11, %s1191_s11, %s1192_s12   ;;  %v679_v18 = vmul.f32 %v1271_v51, %v1271_v51  ;;  %v654_v19 = vadd.f32 %v1271_v51, %v653_v13  ;;  %v693_v20 = vadd.f32 %v692_v12, %v678_v14  ;;  %v370_v21 = vmul.f32 %v888_v63, %v888_v63  ;;  %v330_v46 = vld [vmem:[#allocation13] sm:$0x1]  ;;  %v640_v50 = vld [vmem:[#allocation16] sm:$0x1] }
 0x142   :  { %v345_v22 = vadd.f32 %v888_v63, %v344_v16  ;;  %v384_v23 = vadd.f32 %v383_v17, %v369_v15  ;;  %v680_v24 = vmul.f32 %v920_v3, %v920_v3  ;;  %s1193_s4 = smov [#allocation13]   ;;  %v354_v51 = vld [vmem:[#allocation14] sm:$0x1]  ;;  %s1194_s18 = smov [#allocation14]   ;;  %v664_v56 = vld [vmem:[#allocation17] sm:$0x1] }
 0x143   :  { %v655_v25 = vadd.f32 %v920_v3, %v654_v19  ;;  %v694_v26 = vadd.f32 %v693_v20, %v679_v18  ;;  %s734_s5 = sshll.u32 %s1193_s4, 4  ;;  %s744_s19 = sshll.u32 %s1194_s18, 4  ;;  %s735_s5 = int_to_ptr.vmem [resolvable:$true] %s734_s5  ;;  %s745_s19 = int_to_ptr.vmem [resolvable:$true] %s744_s19 }
 0x144   :  { %v346_v27 = vrot.slane %v345_v22, 4  ;;  %v385_v28 = vadd.f32 %v384_v23, %v370_v21  ;;  %s1195_s20 = smov [#allocation16]   ;;  %s1196_s22 = smov [#allocation17]  }
 0x145   :  { %v656_v29 = vrot.slane %v655_v25, 4  ;;  %v695_v30 = vadd.f32 %v694_v26, %v680_v24  ;;  %s754_s21 = sshll.u32 %s1195_s20, 4  ;;  %s764_s23 = sshll.u32 %s1196_s22, 4  ;;  %s1290_s21 = int_to_ptr.vmem [resolvable:$true] %s754_s21  ;;  %s765_s23 = int_to_ptr.vmem [resolvable:$true] %s764_s23 }
 0x146   :  { %v347_v31 = vadd.f32 %v346_v27, %v345_v22  ;;  %v386_v32 = vrot.slane %v385_v28, 4  ;;  %s1088_s24 = scalar_lea.vmem %s735_s5, 16  ;;  %s1092_s1 = scalar_lea.vmem %s735_s5, 32 }
 0x147   :  { %v657_v33 = vadd.f32 %v656_v29, %v655_v25  ;;  %v696_v34 = vrot.slane %v695_v30, 4  ;;  %p1089_p2 = scmp.ne.s32.totalorder %s735_s5, %s1088_s24  ;;  %p1093_p3 = scmp.lt.s32.totalorder %s735_s5, %s735_s5 }
 0x148   :  { %v348_v35 = vrot.slane %v347_v31, 2  ;;  %v387_v36 = vadd.f32 %v386_v32, %v385_v28  ;;  %p1094_p4 = scmp.lt.s32.totalorder %s1092_s1, %s1088_s24 }
 0x149   :  { %v658_v37 = vrot.slane %v657_v33, 2  ;;  %v697_v38 = vadd.f32 %v696_v34, %v695_v30 }
 0x14a   :  { %v349_v39 = vadd.f32 %v348_v35, %v347_v31  ;;  %v388_v40 = vrot.slane %v387_v36, 2  ;;  %p1095_p5 = por %p1094_p4, %p1093_p3 }
 0x14b   :  { %v659_v41 = vadd.f32 %v658_v37, %v657_v33  ;;  %v698_v42 = vrot.slane %v697_v38, 2 }
 0x14c   :  { %v350_v43 = vrot.slane %v349_v39, 1  ;;  %v389_v44 = vadd.f32 %v388_v40, %v387_v36  ;;  %p1096_p6 = pnand %p1095_p5, %p1089_p2 }
 0x14d   :  { %v660_v45 = vrot.slane %v659_v41, 1  ;;  %v699_v47 = vadd.f32 %v698_v42, %v697_v38 }
 0x14e   :  { %v390_v48 = vrot.slane %v389_v44, 1  ;;  %v351_v49 = vadd.f32 %v350_v43, %v349_v39 }
 0x14f   :  { %v661_v52 = vadd.f32 %v660_v45, %v659_v41  ;;  %v700_v53 = vrot.slane %v699_v47, 1 }
 0x150   :  { %v391_v54 = vadd.f32 %v390_v48, %v389_v44  ;;  %v352_v55 = vadd.f32 %v351_v49, %v330_v46 }
 0x151   :  { %v662_v57 = vadd.f32 %v661_v52, %v640_v50  ;;  %v701_v58 = vadd.f32 %v700_v53, %v699_v47 }
 0x152   :  { %v392_v59 = vadd.f32 %v391_v54, %v354_v51  ;;  %353 = vst [vmem:[#allocation13] sm:$0x1] %v352_v55 }
 0x153   :  { %1099 = shalt.err (!%p1096_p6)
}
 0x154   :  { %737 = dma.vmem_to_hbm [thread:$0]  %s735_s5, 16, %s1316_s6, [#allocation12]   ;;  %663 = vst [vmem:[#allocation16] sm:$0x1] %v662_v57  ;;  %v702_v60 = vadd.f32 %v701_v58, %v664_v56  ;;  %393 = vst [vmem:[#allocation14] sm:$0x1] %v392_v59 }
 0x155   :  { %s1108_s0 = scalar_lea.vmem %s745_s19, 16  ;;  %s1112_s27 = scalar_lea.vmem %s745_s19, 32 }
 0x156   :  { %p1109_p7 = scmp.ne.s32.totalorder %s745_s19, %s1108_s0  ;;  %p1113_p8 = scmp.lt.s32.totalorder %s745_s19, %s745_s19 }
 0x157   :  { %p1114_p9 = scmp.lt.s32.totalorder %s1112_s27, %s1108_s0 }
 0x159   :  { %p1115_p10 = por %p1114_p9, %p1113_p8 }
 0x15b   :  { %p1116_p11 = pnand %p1115_p10, %p1109_p7 }
 0x15d   :  { %1119 = shalt.err (!%p1116_p11)
}
 0x15e   :  { %747 = dma.vmem_to_hbm [thread:$0]  %s745_s19, 16, %s1317_s7, [#allocation15]   ;;  %703 = vst [vmem:[#allocation17] sm:$0x1] %v702_v60 }
 0x15f   :  { %s1128_s6 = scalar_lea.vmem %s1290_s21, 16  ;;  %s1132_s3 = scalar_lea.vmem %s1290_s21, 32 }
 0x160   :  { %p1129_p12 = scmp.ne.s32.totalorder %s1290_s21, %s1128_s6  ;;  %p1133_p13 = scmp.lt.s32.totalorder %s1290_s21, %s1290_s21 }
 0x161   :  { %p1134_p0 = scmp.lt.s32.totalorder %s1132_s3, %s1128_s6 }
 0x163   :  { %p1135_p1 = por %p1134_p0, %p1133_p13 }
 0x165   :  { %p1136_p2 = pnand %p1135_p1, %p1129_p12 }
 0x167   :  { %1139 = shalt.err (!%p1136_p2)
}
 0x168   :  { %757 = dma.vmem_to_hbm [thread:$0]  %s1290_s21, 16, %s1318_s8, [#allocation15]  }
 0x169   :  { %s1148_s10 = scalar_lea.vmem %s765_s23, 16  ;;  %s1152_s11 = scalar_lea.vmem %s765_s23, 32 }
 0x16a   :  { %p1149_p3 = scmp.ne.s32.totalorder %s765_s23, %s1148_s10  ;;  %p1153_p4 = scmp.lt.s32.totalorder %s765_s23, %s765_s23 }
 0x16b   :  { %p1154_p5 = scmp.lt.s32.totalorder %s1152_s11, %s1148_s10 }
 0x16d   :  { %p1155_p6 = por %p1154_p5, %p1153_p4 }
 0x16f   :  { %p1156_p7 = pnand %p1155_p6, %p1149_p3 }
 0x171   :  { %1159 = shalt.err (!%p1156_p7)
}
 0x172   :  { %767 = dma.vmem_to_hbm [thread:$0]  %s765_s23, 16, %s1319_s9, [#allocation18]  }
 0x173   :  { %1174 = dma.done.wait [#allocation4], 2048  }
 0x174   :  { %1175 = vsyncadd [#allocation4], 4294965248 }
 0x175   :  { %1176 = dma.done.wait [#allocation12], 2064  }
 0x176   :  { %1177 = vsyncadd [#allocation12], 4294965232 }
 0x177   :  { %1178 = dma.done.wait [#allocation15], 32  }
 0x178   :  { %1179 = vsyncadd [#allocation15], 4294967264 }
 0x179   :  { %1180 = dma.done.wait [#allocation18], 16  }
 0x17a   :  { %1181 = vsyncadd [#allocation18], 4294967280 }
 0x17b   :  { %786 = vsyncpa [#allocation3], 1 }
 0x17c   :  { %787 = vsyncpa [#allocation6], 1 }
 0x17d   :  { %788 = vsyncpa [#allocation9], 1 }
 0x17e   :  { %789 = vsyncpa [#allocation4], 1 }
 0x17f   :  { %790 = vsyncpa [#allocation12], 1 }
 0x180   :  { %791 = vsyncpa [#allocation15], 1 }
 0x181   :  { %792 = vsyncpa [#allocation18], 1 }

</bundles_post_ra>
